<compile_context>
chip_gen: v7x
topology: tpu7x:2x2x1
jax: 0.10.0
libtpu: 0.0.40
codegen_flags: <defaults>
</compile_context>

<pallas_src>
import jax
import jax.numpy as jnp
from jax import lax
from jax.experimental import pallas as pl
from jax.experimental.pallas import tpu as pltpu


def _produal_kernel(w_ref, c_ref, out_ref, acc_ref):
    # w_ref  : (C_pad, tD) f32 VMEM  -- classifier_weight tile (untransposed)
    # c_ref  : (tD, C_pad) f32 VMEM  -- centers tile
    # out_ref: (1, 1)      f32 VMEM  -- scalar loss
    # acc_ref: (3,)        f32 SMEM  -- [s_ww, s_pp, s_wp] running sums
    step = pl.program_id(0)

    @pl.when(step == 0)
    def _init():
        acc_ref[0] = 0.0
        acc_ref[1] = 0.0
        acc_ref[2] = 0.0

    w = w_ref[...]
    c = c_ref[...]

    # Self norms need no alignment between the two operands.
    acc_ref[0] += jnp.sum(w * w)
    acc_ref[1] += jnp.sum(c * c)

    # Cross term: <W.T, centers>_F == trace(W @ centers), on the MXU.
    # (Full C_pad x C_pad product is cheap for small num_classes; only the
    # diagonal is kept.)
    prod = jnp.dot(w, c, preferred_element_type=jnp.float32)  # (C_pad, C_pad)
    row = lax.broadcasted_iota(jnp.int32, prod.shape, 0)
    col = lax.broadcasted_iota(jnp.int32, prod.shape, 1)
    acc_ref[2] += jnp.sum(jnp.where(row == col, prod, 0.0))

    @pl.when(step == pl.num_programs(0) - 1)
    def _finalize():
        # Do the tiny finalize math in vector form (EUP rsqrt/sqrt).
        s_ww = jnp.full((1, 1), acc_ref[0], dtype=jnp.float32)
        s_pp = jnp.full((1, 1), acc_ref[1], dtype=jnp.float32)
        s_wp = jnp.full((1, 1), acc_ref[2], dtype=jnp.float32)
        cos = s_wp * lax.rsqrt(s_ww) * lax.rsqrt(s_pp)
        # ||cw - cp||_F^2 = 2 - 2*cos ; clamp guards tiny negative rounding.
        out_ref[...] = jnp.sqrt(jnp.maximum(2.0 - 2.0 * cos, 0.0))


def _round_up(x, m):
    return (x + m - 1) // m * m


def _choose_tile_d(d_pad, c_pad):
    # Keep each per-input tile <= ~4 MiB: c_pad * tile * 4B <= 4 MiB.
    max_rows = max(128, ((1 << 20) // c_pad) // 128 * 128)
    tile = min(d_pad, max_rows)
    while d_pad % tile != 0:
        tile -= 128
    return tile


def produal_loss(centers, classifier_weight):
    """centers: (D, C); classifier_weight: (C, D). Returns scalar f32 loss."""
    centers = jnp.asarray(centers, jnp.float32)
    w = jnp.asarray(classifier_weight, jnp.float32)
    d, c = centers.shape
    assert w.shape == (c, d), (w.shape, centers.shape)

    c_pad = _round_up(c, 8)
    d_pad = _round_up(d, 128)
    # Zero padding leaves s_ww, s_pp and trace(W @ centers) unchanged.
    w_p = jnp.pad(w, ((0, c_pad - c), (0, d_pad - d)))
    cen_p = jnp.pad(centers, ((0, d_pad - d), (0, c_pad - c)))

    tile_d = _choose_tile_d(d_pad, c_pad)
    grid = (d_pad // tile_d,)

    out = pl.pallas_call(
        _produal_kernel,
        out_shape=jax.ShapeDtypeStruct((1, 1), jnp.float32),
        grid=grid,
        in_specs=[
            pl.BlockSpec((c_pad, tile_d), lambda i: (0, i)),   # W tile
            pl.BlockSpec((tile_d, c_pad), lambda i: (i, 0)),   # centers tile
        ],
        out_specs=pl.BlockSpec((1, 1), lambda i: (0, 0)),
        scratch_shapes=[pltpu.SMEM((3,), jnp.float32)],
        compiler_params=pltpu.CompilerParams(
            dimension_semantics=("arbitrary",)),
    )(w_p, cen_p)
    return out[0, 0]


def _reference(centers, classifier_weight):
    cwt = jnp.transpose(classifier_weight)
    cw = cwt / jnp.linalg.norm(cwt)
    cp = centers / jnp.linalg.norm(centers)
    return jnp.linalg.norm(cw - cp)


if __name__ == "__main__":
    # Small shapes consistent with the module defaults: num_classes=2,
    # feature dim 32.  centers: (D, C); classifier_weight: (C, D).
    num_classes = 2
    feat_dim = 32

    key = jax.random.PRNGKey(0)
    k1, k2 = jax.random.split(key)
    centers = jax.random.normal(k1, (feat_dim, num_classes), dtype=jnp.float32)
    classifier_weight = jax.random.normal(
        k2, (num_classes, feat_dim), dtype=jnp.float32
    )

    loss = produal_loss(centers, classifier_weight)
    loss = jax.block_until_ready(loss)

    ref = _reference(centers, classifier_weight)
    assert jnp.allclose(loss, ref, atol=1e-5, rtol=1e-5), (loss, ref)

    print("KERNEL_OK")
</pallas_src>

<mosaic_0001>
module attributes {stable_mosaic.version = 11 : i64} {
  func.func @_produal_kernel(%arg0: i32, %arg1: memref<8x128xf32, #tpu.memory_space<vmem>>, %arg2: memref<128x8xf32, #tpu.memory_space<vmem>>, %arg3: memref<1x1xf32, #tpu.memory_space<vmem>>, %arg4: memref<3xf32, #tpu.memory_space<smem>>) attributes {dimension_semantics = [#tpu.dimension_semantics<arbitrary>], iteration_bounds = array<i64: 1>, scalar_prefetch = 0 : i64, scratch_operands = 1 : i64, tpu.core_type = #tpu.core_type<tc>, window_params = [{transform_indices = @transform_0, window_bounds = array<i64: 8, 128>}, {transform_indices = @transform_1, window_bounds = array<i64: 128, 8>}, {pipeline_mode = #tpu.pipeline_mode<synchronous>, transform_indices = @transform_2, window_bounds = array<i64: 1, 1>}]} {
    %c0_i32 = arith.constant 0 : i32
    %0 = arith.cmpi eq, %arg0, %c0_i32 : i32
    %1 = arith.extui %0 : i1 to i32
    %c0_i32_0 = arith.constant 0 : i32
    %2 = arith.cmpi ne, %1, %c0_i32_0 : i32
    scf.if %2 {
      %cst_14 = arith.constant 0.000000e+00 : f32
      %c0_15 = arith.constant 0 : index
      %37 = memref.load %arg4[%c0_15] : memref<3xf32, #tpu.memory_space<smem>>
      memref.store %cst_14, %arg4[%c0_15] : memref<3xf32, #tpu.memory_space<smem>>
      %cst_16 = arith.constant 0.000000e+00 : f32
      %c1_17 = arith.constant 1 : index
      %38 = memref.load %arg4[%c1_17] : memref<3xf32, #tpu.memory_space<smem>>
      memref.store %cst_16, %arg4[%c1_17] : memref<3xf32, #tpu.memory_space<smem>>
      %cst_18 = arith.constant 0.000000e+00 : f32
      %c2_19 = arith.constant 2 : index
      %39 = memref.load %arg4[%c2_19] : memref<3xf32, #tpu.memory_space<smem>>
      memref.store %cst_18, %arg4[%c2_19] : memref<3xf32, #tpu.memory_space<smem>>
    } else {
    }
    %c0 = arith.constant 0 : index
    %c0_1 = arith.constant 0 : index
    %3 = vector.load %arg1[%c0, %c0_1] : memref<8x128xf32, #tpu.memory_space<vmem>>, vector<8x128xf32>
    %c0_2 = arith.constant 0 : index
    %c0_3 = arith.constant 0 : index
    %4 = vector.load %arg2[%c0_2, %c0_3] : memref<128x8xf32, #tpu.memory_space<vmem>>, vector<128x8xf32>
    %c0_4 = arith.constant 0 : index
    %5 = memref.load %arg4[%c0_4] : memref<3xf32, #tpu.memory_space<smem>>
    %6 = arith.mulf %3, %3 : vector<8x128xf32>
    %7 = vector.shape_cast %6 : vector<8x128xf32> to vector<1x8x128xf32>
    %cst = arith.constant dense<0.000000e+00> : vector<1xf32>
    %8 = vector.multi_reduction <add>, %7, %cst [1, 2] : vector<1x8x128xf32> to vector<1xf32>
    %9 = vector.shape_cast %8 : vector<1xf32> to vector<1x1x1xf32>
    %10 = vector.extract %9[0, 0, 0] : f32 from vector<1x1x1xf32>
    %11 = arith.addf %5, %10 : f32
    %c0_5 = arith.constant 0 : index
    %12 = memref.load %arg4[%c0_5] : memref<3xf32, #tpu.memory_space<smem>>
    memref.store %11, %arg4[%c0_5] : memref<3xf32, #tpu.memory_space<smem>>
    %c1 = arith.constant 1 : index
    %13 = memref.load %arg4[%c1] : memref<3xf32, #tpu.memory_space<smem>>
    %14 = arith.mulf %4, %4 : vector<128x8xf32>
    %15 = vector.shape_cast %14 : vector<128x8xf32> to vector<1x128x8xf32>
    %cst_6 = arith.constant dense<0.000000e+00> : vector<1xf32>
    %16 = vector.multi_reduction <add>, %15, %cst_6 [1, 2] : vector<1x128x8xf32> to vector<1xf32>
    %17 = vector.shape_cast %16 : vector<1xf32> to vector<1x1x1xf32>
    %18 = vector.extract %17[0, 0, 0] : f32 from vector<1x1x1xf32>
    %19 = arith.addf %13, %18 : f32
    %c1_7 = arith.constant 1 : index
    %20 = memref.load %arg4[%c1_7] : memref<3xf32, #tpu.memory_space<smem>>
    memref.store %19, %arg4[%c1_7] : memref<3xf32, #tpu.memory_space<smem>>
    %cst_8 = arith.constant dense<0.000000e+00> : vector<8x8xf32>
    %21 = tpu.matmul %3, %4, %cst_8 {dimension_numbers = #tpu.dot_dimension_numbers<[1], [0], [0], [1], [0, 0, 1, 1], [], []>} : vector<8x128xf32>, vector<128x8xf32>, vector<8x8xf32> -> vector<8x8xf32>
    %22 = tpu.iota {dimensions = array<i32: 0>} : vector<8x8xi32>
    %23 = tpu.iota {dimensions = array<i32: 1>} : vector<8x8xi32>
    %c2 = arith.constant 2 : index
    %24 = memref.load %arg4[%c2] : memref<3xf32, #tpu.memory_space<smem>>
    %25 = arith.cmpi eq, %22, %23 : vector<8x8xi32>
    %cst_9 = arith.constant 0.000000e+00 : f32
    %26 = vector.broadcast %cst_9 : f32 to vector<8x8xf32>
    %27 = arith.select %25, %21, %26 : vector<8x8xi1>, vector<8x8xf32>
    %28 = vector.shape_cast %27 : vector<8x8xf32> to vector<1x8x8xf32>
    %cst_10 = arith.constant dense<0.000000e+00> : vector<1xf32>
    %29 = vector.multi_reduction <add>, %28, %cst_10 [1, 2] : vector<1x8x8xf32> to vector<1xf32>
    %30 = vector.shape_cast %29 : vector<1xf32> to vector<1x1x1xf32>
    %31 = vector.extract %30[0, 0, 0] : f32 from vector<1x1x1xf32>
    %32 = arith.addf %24, %31 : f32
    %c2_11 = arith.constant 2 : index
    %33 = memref.load %arg4[%c2_11] : memref<3xf32, #tpu.memory_space<smem>>
    memref.store %32, %arg4[%c2_11] : memref<3xf32, #tpu.memory_space<smem>>
    %c0_i32_12 = arith.constant 0 : i32
    %34 = arith.cmpi eq, %arg0, %c0_i32_12 : i32
    %35 = arith.extui %34 : i1 to i32
    %c0_i32_13 = arith.constant 0 : i32
    %36 = arith.cmpi ne, %35, %c0_i32_13 : i32
    scf.if %36 {
      %c0_14 = arith.constant 0 : index
      %37 = memref.load %arg4[%c0_14] : memref<3xf32, #tpu.memory_space<smem>>
      %38 = vector.broadcast %37 : f32 to vector<1x1xf32>
      %c1_15 = arith.constant 1 : index
      %39 = memref.load %arg4[%c1_15] : memref<3xf32, #tpu.memory_space<smem>>
      %40 = vector.broadcast %39 : f32 to vector<1x1xf32>
      %c2_16 = arith.constant 2 : index
      %41 = memref.load %arg4[%c2_16] : memref<3xf32, #tpu.memory_space<smem>>
      %42 = vector.broadcast %41 : f32 to vector<1x1xf32>
      %43 = math.rsqrt %38 : vector<1x1xf32>
      %44 = arith.mulf %42, %43 : vector<1x1xf32>
      %45 = math.rsqrt %40 : vector<1x1xf32>
      %46 = arith.mulf %44, %45 : vector<1x1xf32>
      %cst_17 = arith.constant 2.000000e+00 : f32
      %47 = vector.broadcast %cst_17 : f32 to vector<1x1xf32>
      %48 = arith.mulf %47, %46 : vector<1x1xf32>
      %cst_18 = arith.constant 2.000000e+00 : f32
      %49 = vector.broadcast %cst_18 : f32 to vector<1x1xf32>
      %50 = arith.subf %49, %48 : vector<1x1xf32>
      %cst_19 = arith.constant 0.000000e+00 : f32
      %51 = vector.broadcast %cst_19 : f32 to vector<1x1xf32>
      %52 = arith.maximumf %50, %51 : vector<1x1xf32>
      %53 = math.sqrt %52 : vector<1x1xf32>
      %c0_20 = arith.constant 0 : index
      %c0_21 = arith.constant 0 : index
      %54 = vector.load %arg3[%c0_20, %c0_21] : memref<1x1xf32, #tpu.memory_space<vmem>>, vector<1x1xf32>
      tpu.vector_store %arg3[%c0_20, %c0_21], %53 {strides = array<i32>} : memref<1x1xf32, #tpu.memory_space<vmem>>, vector<1x1xf32>,
    } else {
    }
    return
  }
  func.func @transform_0(%arg0: i32) -> (i32, i32) {
    %c0_i32 = arith.constant 0 : i32
    %c0_i32_0 = arith.constant 0 : i32
    return %c0_i32, %arg0 : i32, i32
  }
  func.func @transform_1(%arg0: i32) -> (i32, i32) {
    %c0_i32 = arith.constant 0 : i32
    %c0_i32_0 = arith.constant 0 : i32
    return %arg0, %c0_i32 : i32, i32
  }
  func.func @transform_2(%arg0: i32) -> (i32, i32) {
    %c0_i32 = arith.constant 0 : i32
    %c0_i32_0 = arith.constant 0 : i32
    %c0_i32_1 = arith.constant 0 : i32
    return %c0_i32, %c0_i32_0 : i32, i32
  }
}

</mosaic_0001>

<bundles_post_ra>
// kernel: tpu_custom_call.1
= control target key start
LH: loop header
LB: loop body
LE: loop exit
PB: predicated region body
PF: predicated region fallthrough
CT: control target
= control target key end

     0   :  { %vm70_vm0 = vcmask 64512   ;;  %v363_v3 = vmov 0.0|0.0   ;;  %s470_s0 = inlined_call_operand.vmem [shape: f32[8,128], index: 0, kind: input, shape index: {}]   ;;  %s471_s1 = inlined_call_operand.vmem [shape: f32[128,8], index: 1, kind: input, shape index: {}]   ;;  %s472_s2 = inlined_call_operand.hbm [shape: f32[1,1], index: 2, kind: output, shape index: {}]  }
   0x1   :  { %v23_v0 = vld [vmem:[%s471_s1] sm:$0xff]  ;;  %v24_v1 = vld [vmem:[%s471_s1 + $0x8] sm:$0xff]  ;;  %v25_v2 = vld [vmem:[%s471_s1 + $0x10] sm:$0xff]  ;;  %299 = vmatprep.subr.bf16.mxu0 %v363_v3 }
   0x2   :  { %v54_v4 = vmul.f32 %v23_v0, %v23_v0  ;;  %v55_v5 = vmul.f32 %v24_v1, %v24_v1  ;;  %v300_v6 = vpack.c.bf16 %v24_v1, %v23_v0  ;;  %v26_v7 = vld [vmem:[%s471_s1 + $0x18] sm:$0xff]  ;;  %v56_v8 = vmul.f32 %v25_v2, %v25_v2  ;;  %v27_v11 = vld [vmem:[%s471_s1 + $0x20] sm:$0xff]  ;;  %v28_v17 = vld [vmem:[%s471_s1 + $0x28] sm:$0xff] }
   0x3   :  { %v57_v9 = vmul.f32 %v26_v7, %v26_v7  ;;  %v303_v10 = vpack.c.bf16 %v26_v7, %v25_v2  ;;  %v58_v15 = vmul.f32 %v27_v11, %v27_v11  ;;  %v59_v19 = vmul.f32 %v28_v17, %v28_v17 }
   0x4   :  { %v71_v12 = vsel %vm70_vm0, %v54_v4, 0.0  ;;  %v72_v13 = vsel %vm70_vm0, %v55_v5, 0.0  ;;  %301 = vmatpush3.bf16.msra.mxu0 %v300_v6  ;;  %v74_v14 = vsel %vm70_vm0, %v56_v8, 0.0 }
   0x5   :  { %v73_v16 = vadd.f32 %v72_v13, %v71_v12  ;;  %302 = vmatprep.subr.bf16.mxu0 %v363_v3  ;;  %v76_v18 = vsel %vm70_vm0, %v57_v9, 0.0 }
   0x6   :  { %7 = vsyncpa [#allocation4], 0  ;;  %v29_v21 = vld [vmem:[%s471_s1 + $0x30] sm:$0xff]  ;;  %v78_v22 = vsel %vm70_vm0, %v58_v15, 0.0  ;;  %v306_v23 = vpack.c.bf16 %v28_v17, %v27_v11  ;;  %v30_v26 = vld [vmem:[%s471_s1 + $0x38] sm:$0xff]  ;;  %v80_v27 = vsel %vm70_vm0, %v59_v19, 0.0 }
   0x7   :  { %v75_v20 = vadd.f32 %v74_v14, %v73_v16  ;;  %v60_v24 = vmul.f32 %v29_v21, %v29_v21  ;;  %v61_v28 = vmul.f32 %v30_v26, %v30_v26  ;;  %v31_v30 = vld [vmem:[%s471_s1 + $0x40] sm:$0xff]  ;;  %v309_v33 = vpack.c.bf16 %v30_v26, %v29_v21  ;;  %v32_v38 = vld [vmem:[%s471_s1 + $0x48] sm:$0xff]  ;;  %v33_v42 = vld [vmem:[%s471_s1 + $0x50] sm:$0xff]  ;;  %s366_s16 = smov [#allocation3]  }
   0x8   :  { %304 = vmatpush3.bf16.msra.mxu0 %v303_v10  ;;  %v22_v31 = vld [vmem:[%s470_s0] sm:$0xff]  ;;  %v62_v34 = vmul.f32 %v31_v30, %v31_v30  ;;  %vm364_vm1 = vmmov 0   ;;  %v365_v35 = vmov 0.0   ;;  %v63_v40 = vmul.f32 %v32_v38, %v32_v38  ;;  %v34_v47 = vld [vmem:[%s471_s1 + $0x58] sm:$0xff]  ;;  %v36_v56 = vld [vmem:[%s471_s1 + $0x68] sm:$0xff]  ;;  %s235_s17 = sshll.u32 %s366_s16, 4  ;;  %s236_s17 = int_to_ptr.vmem [resolvable:$true] %s235_s17 }
   0x9   :  { %v77_v25 = vadd.f32 %v76_v18, %v75_v20  ;;  %305 = vmatprep.subr.bf16.mxu0 %v363_v3  ;;  %v82_v32 = vsel %vm70_vm0, %v60_v24, 0.0  ;;  %296 = vmatprep.mubr.msk.f32.mxu0 %vm364_vm1, %v365_v35  ;;  %v40_v36 = vmul.f32 %v22_v31, %v22_v31  ;;  %v84_v39 = vsel %vm70_vm0, %v61_v28, 0.0  ;;  %v35_v51 = vld [vmem:[%s471_s1 + $0x60] sm:$0xff]  ;;  %v37_v60 = vld [vmem:[%s471_s1 + $0x70] sm:$0xff]  ;;  %v38_v1 = vld [vmem:[%s471_s1 + $0x78] sm:$0xff]  ;;  %s339_s18 = scalar_lea.vmem %s236_s17, 16  ;;  %p344_p1 = scmp.lt.s32.totalorder %s236_s17, %s236_s17 }
   0xa   :  { %v86_v43 = vsel %vm70_vm0, %v62_v34, 0.0  ;;  %v312_v44 = vpack.c.bf16 %v32_v38, %v31_v30  ;;  %v64_v45 = vmul.f32 %v33_v42, %v33_v42  ;;  %v88_v48 = vsel %vm70_vm0, %v63_v40, 0.0  ;;  %p340_p0 = scmp.ne.s32.totalorder %s236_s17, %s339_s18  ;;  %s343_s19 = scalar_lea.vmem %s236_s17, 32 }
   0xb   :  { %v79_v29 = vadd.f32 %v78_v22, %v77_v25  ;;  %41 = vadd.xlane.f32.xlu0 %v40_v36  ;;  %v65_v49 = vmul.f32 %v34_v47, %v34_v47  ;;  %v315_v53 = vpack.c.bf16 %v34_v47, %v33_v42  ;;  %v66_v54 = vmul.f32 %v35_v51, %v35_v51  ;;  %p345_p2 = scmp.lt.s32.totalorder %s343_s19, %s339_s18 }
   0xc   :  { %307 = vmatpush3.bf16.msra.mxu0 %v306_v23  ;;  %v90_v52 = vsel %vm70_vm0, %v64_v45, 0.0  ;;  %v67_v58 = vmul.f32 %v36_v56, %v36_v56  ;;  %v318_v62 = vpack.c.bf16 %v36_v56, %v35_v51  ;;  %v68_v63 = vmul.f32 %v37_v60, %v37_v60 }
   0xd   :  { %v81_v37 = vadd.f32 %v80_v27, %v79_v29  ;;  %308 = vmatprep.subr.bf16.mxu0 %v363_v3  ;;  %v92_v57 = vsel %vm70_vm0, %v65_v49, 0.0  ;;  %v94_v61 = vsel %vm70_vm0, %v66_v54, 0.0  ;;  %v69_v2 = vmul.f32 %v38_v1, %v38_v1  ;;  %p346_p3 = por %p345_p2, %p344_p1 }
   0xe   :  { %v96_v4 = vsel %vm70_vm0, %v67_v58, 0.0  ;;  %v321_v6 = vpack.c.bf16 %v38_v1, %v37_v60  ;;  %v98_v7 = vsel %vm70_vm0, %v68_v63, 0.0  ;;  %v184_v25 = vlaneseq }
   0xf   :  { %v83_v41 = vadd.f32 %v82_v32, %v81_v37  ;;  %v100_v9 = vsel %vm70_vm0, %v69_v2, 0.0  ;;  %vm227_vm4 = vcmask 0   ;;  %p347_p4 = pnand %p346_p3, %p340_p0 }
  0x10   :  { %310 = vmatpush3.bf16.msra.mxu0 %v309_v33  ;;  %v185_v26 = vshrl.u32 %v184_v25, 7  ;;  %v187_v27 = vand.u32 127, %v184_v25 }
  0x11   :  { %v85_v46 = vadd.f32 %v84_v39, %v83_v41  ;;  %311 = vmatprep.subr.bf16.mxu0 %v363_v3 }
  0x12   :  { %vm189_vm2 = vcmp.eq.s32.totalorder %v185_v26, %v187_v27 }
  0x13   :  { %v87_v50 = vadd.f32 %v86_v43, %v85_v46 }
  0x14   :  { %313 = vmatpush3.bf16.msra.mxu0 %v312_v44 }
  0x15   :  { %v89_v55 = vadd.f32 %v88_v48, %v87_v50  ;;  %314 = vmatprep.subr.bf16.mxu0 %v363_v3 }
  0x17   :  { %v91_v59 = vadd.f32 %v90_v52, %v89_v55 }
  0x18   :  { %316 = vmatpush3.bf16.msra.mxu0 %v315_v53 }
  0x19   :  { %v93_v0 = vadd.f32 %v92_v57, %v91_v59  ;;  %317 = vmatprep.subr.bf16.mxu0 %v363_v3 }
  0x1b   :  { %v95_v5 = vadd.f32 %v94_v61, %v93_v0 }
  0x1c   :  { %319 = vmatpush3.bf16.msra.mxu0 %v318_v62 }
  0x1d   :  { %320 = vmatprep.subr.bf16.mxu0 %v363_v3  ;;  %v97_v8 = vadd.f32 %v96_v4, %v95_v5 }
  0x1f   :  { %v99_v10 = vadd.f32 %v98_v7, %v97_v8 }
  0x20   :  { %322 = vmatpush3.bf16.msra.mxu0 %v321_v6 }
  0x21   :  { %v101_v11 = vadd.f32 %v100_v9, %v99_v10 }
  0x23   :  { %297 = vmatmul.mubr.f32.vlgmr.msra.gmra.mrb[0].mxu0 %v22_v31  ;;  %102 = vadd.xlane.f32.xlu0 %v101_v11 }
  0x98   :  { %v42_v12 = vpop.xlane.xlu0 %41 }
  0x99   :  { %v43_v13 = vrot.slane %v42_v12, 4 }
  0x9b   :  { %v44_v14 = vadd.f32 %v43_v13, %v42_v12 }
  0x9d   :  { %v45_v15 = vrot.slane %v44_v14, 2 }
  0x9f   :  { %v46_v16 = vadd.f32 %v45_v15, %v44_v14 }
  0xa1   :  { %v47_v17 = vrot.slane %v46_v16, 1 }
  0xa3   :  { %v48_v18 = vadd.f32 %v47_v17, %v46_v16 }
  0xa5   :  { %323 = vpush %v48_v18 }
  0xb0   :  { %v103_v19 = vpop.xlane.xlu0 %102 }
  0xb1   :  { %v104_v20 = vrot.slane %v103_v19, 4 }
  0xb3   :  { %v105_v21 = vadd.f32 %v104_v20, %v103_v19 }
  0xb5   :  { %v106_v3 = vrot.slane %v105_v21, 2 }
  0xb7   :  { %v107_v22 = vadd.f32 %v106_v3, %v105_v21 }
  0xb9   :  { %v108_v23 = vrot.slane %v107_v22, 1 }
  0xbb   :  { %v109_v24 = vadd.f32 %v108_v23, %v107_v22 }
  0xbd   :  { %325 = vpush %v109_v24 }
  0xd6   :  { %s324_s1 = spop %323 }
  0xd7   :  { %v208_v39 = vstv %s324_s1 }
  0xd8   :  { %333 = vrsqrt.f32 %v208_v39 }
  0xe2   :  { %v334_v41 = vpop.eup %333 }
  0xee   :  { %s326_s14 = spop %325 }
  0xef   :  { %v210_v40 = vstv %s326_s14 }
  0xf0   :  { %335 = vrsqrt.f32 %v210_v40 }
  0xf6   :  { %v180_v28 = vpop.f32.mrb[0].mxu0 }
  0xf7   :  { %v190_v29 = vsel %vm189_vm2, %v180_v28, 0.0  ;;  %v298_v30 = vpop.f32.mrb[1].mxu0 }
  0xf8   :  { %v191_v31 = vsel %vm70_vm0, %v190_v29, 0.0 }
  0xf9   :  { %192 = vadd.xlane.f32.xlu1 %v191_v31 }
  0xfa   :  { %v336_v44 = vpop.eup %335 }
 0x186   :  { %v193_v32 = vpop.xlane.xlu1 %192 }
 0x187   :  { %v194_v33 = vrot.slane %v193_v32, 4 }
 0x189   :  { %v195_v34 = vadd.f32 %v194_v33, %v193_v32 }
 0x18b   :  { %v196_v35 = vrot.slane %v195_v34, 2 }
 0x18d   :  { %v197_v36 = vadd.f32 %v196_v35, %v195_v34 }
 0x18f   :  { %v198_v37 = vrot.slane %v197_v36, 1 }
 0x191   :  { %v199_v38 = vadd.f32 %v198_v37, %v197_v36 }
 0x193   :  { %327 = vpush %v199_v38 }
 0x1c4   :  { %s328_s15 = spop %327 }
 0x1c5   :  { %v212_v42 = vstv %s328_s15 }
 0x1c6   :  { %v214_v43 = vmul.f32 %v334_v41, %v212_v42 }
 0x1c8   :  { %v216_v45 = vmul.f32 %v336_v44, %v214_v43 }
 0x1ca   :  { %v217_v46 = vmul.f32 2.0, %v216_v45 }
 0x1cc   :  { %v218_v47 = vsub.f32 2.0, %v217_v46 }
 0x1ce   :  { %v219_v48 = vmax.f32 %v218_v47, 0.0 }
 0x1d0   :  { %337 = vrsqrt.f32 %v219_v48  ;;  %vm222_vm3 = vcmp.eq.f32.partialorder %v219_v48, inf  ;;  %v225_v51 = vand.u32 2147483648, %v219_v48  ;;  %vm224_vm5 = vcmp.eq.f32.partialorder %v219_v48, 0.0 }
 0x1da   :  { %v338_v49 = vpop.eup %337 }
 0x1db   :  { %v221_v50 = vmul.f32 %v338_v49, %v219_v48 }
 0x1dd   :  { %v223_v52 = vsel %vm222_vm3, %v219_v48, %v221_v50 }
 0x1de   :  { %v226_v53 = vsel %vm224_vm5, %v225_v51, %v223_v52 }
 0x1df   :  { %228 = vst.msk [vmem:[#allocation3] sm:$0x1] %vm227_vm4, %v226_v53 }
 0x1e0   :  { %350 = shalt.err (!%p347_p4)
}
 0x1e1   :  { %s351_s22 = scalar_lea.hbm %s472_s2, 16 }
 0x1e2   :  { %p352_p5 = scmp.ne.s32.totalorder %s472_s2, %s351_s22  ;;  %p355_p6 = scmp.lt.u32.totalorder %s351_s22, %s472_s2 }
 0x1e4   :  { %p357_p7 = pnand %p355_p6, %p352_p5 }
 0x1e6   :  { %360 = shalt.err (!%p357_p7)
}
 0x1e7   :  { %238 = dma.vmem_to_hbm [thread:$0]  %s236_s17, 16, %s472_s2, [#allocation4]  }
 0x1e8   :  { %361 = dma.done.wait [#allocation4], 16  }
 0x1e9   :  { %362 = vsyncadd [#allocation4], 4294967280 }
 0x1ea   :  { %242 = vsyncpa [#allocation4], 1 }

</bundles_post_ra>
